<compile_context>
chip_gen: v7x
topology: tpu7x:2x2x1
jax: 0.10.0
libtpu: 0.0.40
codegen_flags: <defaults>
</compile_context>

<pallas_src>
import functools

import jax
import jax.numpy as jnp
from jax.experimental import pallas as pl
from jax.experimental.pallas import tpu as pltpu


def _round_up(x, m):
    return ((x + m - 1) // m) * m


def _sine_layer_kernel(x_ref, w_ref, b_ref, o_ref, *, scale):
    # x_ref: (tm, in_f)   w_ref: (in_f, out_p)   b_ref: (1, out_p)   o_ref: (tm, out_p)
    x = x_ref[...]
    if x.dtype != w_ref.dtype:
        # bf16-input / f32-accumulate MXU path when the weight is stored in bf16.
        x = x.astype(w_ref.dtype)
    z = jnp.dot(x, w_ref[...], preferred_element_type=jnp.float32)
    z = z + b_ref[...]                 # bias-add in f32 (broadcast over rows)
    out = jnp.sin(z)                   # epilogue kept in f32 (v5e VPU has no bf16)
    if scale is not None:              # post-sine scale, matching the PyTorch module
        out = out * scale
    o_ref[...] = out.astype(o_ref.dtype)


def prepare_sine_layer_params(weight, bias, *, compute_dtype=jnp.float32):
    """One-time parameter prep (do this OUTSIDE the per-step call):
    transpose to (in_f, out_f), zero-pad out_f to a lane-dense multiple of 128,
    and cast the weight to the matmul compute dtype (f32 or bf16)."""
    out_f, in_f = weight.shape
    assert bias.shape == (out_f,)
    out_p = _round_up(out_f, 128)
    w_t = weight.T                                   # (in_f, out_f)
    b2 = bias.reshape(1, out_f).astype(jnp.float32)  # bias stays f32
    if out_p != out_f:
        w_t = jnp.pad(w_t, ((0, 0), (0, out_p - out_f)))
        b2 = jnp.pad(b2, ((0, 0), (0, out_p - out_f)))
    return w_t.astype(compute_dtype), b2, out_f


def sine_layer_apply(x, w_t, b2, out_f, *, is_first=False, is_last=False, tm=512):
    """x: (N, in_f) f32. w_t: (in_f, out_p) prepared weight. b2: (1, out_p) f32."""
    N, in_f = x.shape
    in_f_w, out_p = w_t.shape
    assert in_f == in_f_w and out_p % 128 == 0 and b2.shape == (1, out_p)

    # Post-sine scale per the PyTorch module; skip the multiply if it is 1.0.
    scale = 1.0
    if is_first:
        scale *= 30.0
    if is_last:
        scale /= 30.0
    if scale == 1.0:
        scale = None

    # Row tile: large enough to amortize the ~0.35us/step overhead and feed the
    # MXU, small enough that the double-buffered x/out tiles + resident weight
    # stay inside the default scoped-VMEM budget (v5e: 16 MiB) on every chip.
    x_bytes = jnp.dtype(x.dtype).itemsize
    w_bytes = jnp.dtype(w_t.dtype).itemsize

    def vmem_estimate(t):
        return (2 * t * (in_f * x_bytes + out_p * x_bytes)      # x/out tiles (2-buf)
                + 2 * (in_f * out_p * w_bytes + out_p * 4))     # resident weight/bias

    tm_eff = min(tm, _round_up(N, 16))
    while tm_eff > 16 and vmem_estimate(tm_eff) > 12 * 1024 * 1024:
        tm_eff //= 2
    tm_eff = max(16, (tm_eff // 16) * 16)

    # Pad rows so the grid covers N exactly (padded rows are sliced off below).
    n_pad = _round_up(N, tm_eff)
    x_p = x if n_pad == N else jnp.pad(x, ((0, n_pad - N), (0, 0)))
    grid = (n_pad // tm_eff,)

    # TODO(synk): for very wide layers (in_f*out_p f32 >> 16 MiB) add a second
    # 'parallel' grid axis over out_p; unnecessary for typical SIREN widths.
    out = pl.pallas_call(
        functools.partial(_sine_layer_kernel, scale=scale),
        out_shape=jax.ShapeDtypeStruct((n_pad, out_p), x.dtype),
        grid_spec=pltpu.PrefetchScalarGridSpec(
            num_scalar_prefetch=0,
            grid=grid,
            in_specs=[
                pl.BlockSpec((tm_eff, in_f), lambda i: (i, 0)),
                pl.BlockSpec((in_f, out_p), lambda i: (0, 0)),   # resident weight
                pl.BlockSpec((1, out_p), lambda i: (0, 0)),      # resident bias
            ],
            out_specs=pl.BlockSpec((tm_eff, out_p), lambda i: (i, 0)),
        ),
        compiler_params=pltpu.CompilerParams(
            dimension_semantics=("parallel",)),
    )(x_p, w_t, b2)

    return out[:N, :out_f]


def sine_layer(x, weight, bias, *, is_first=False, is_last=False,
               compute_dtype=jnp.float32, tm=512):
    """Convenience wrapper taking PyTorch-layout params: W (out_f, in_f), b (out_f,).
    For a stacked SIREN MLP, call prepare_sine_layer_params once per layer and
    reuse the prepared (w_t, b2) with sine_layer_apply."""
    w_t, b2, out_f = prepare_sine_layer_params(weight, bias, compute_dtype=compute_dtype)
    return sine_layer_apply(x, w_t, b2, out_f, is_first=is_first, is_last=is_last, tm=tm)


if __name__ == "__main__":
    key = jax.random.PRNGKey(0)
    k_x, k_w, k_b = jax.random.split(key, 3)

    # Small shapes, deliberately NOT multiples of the tile sizes.
    N, in_f, out_f = 48, 32, 64
    x = jax.random.normal(k_x, (N, in_f), dtype=jnp.float32)
    # nn.Linear-shaped synthetic parameters: W (out_f, in_f), b (out_f,)
    bound = 1.0 / jnp.sqrt(in_f)
    weight = jax.random.uniform(k_w, (out_f, in_f), jnp.float32, -bound, bound)
    bias = jax.random.uniform(k_b, (out_f,), jnp.float32, -bound, bound)

    # Reference (is_first=True variant of the module): sin(linear(x)) * 30
    ref = jnp.sin(x @ weight.T + bias) * 30.0

    # 1) f32 matmul path — tight check.
    out_f32 = sine_layer(x, weight, bias, is_first=True, is_last=False,
                         compute_dtype=jnp.float32)
    jax.block_until_ready(out_f32)
    assert out_f32.shape == (N, out_f)
    assert jnp.allclose(out_f32, ref, atol=1e-5, rtol=1e-5), "f32 path mismatch"

    # 2) bf16-input / f32-accumulate matmul path (v6e/v7x perf path) — loose check.
    out_bf16 = sine_layer(x, weight, bias, is_first=True, is_last=False,
                          compute_dtype=jnp.bfloat16)
    jax.block_until_ready(out_bf16)
    assert out_bf16.shape == (N, out_f)
    assert jnp.allclose(out_bf16, ref, atol=1.0, rtol=5e-2), "bf16 path mismatch"

    print("KERNEL_OK")
</pallas_src>

<mosaic_0001>
module attributes {stable_mosaic.version = 11 : i64} {
  func.func @_sine_layer_kernel(%arg0: i32, %arg1: memref<48x32xf32, #tpu.memory_space<vmem>>, %arg2: memref<32x128xf32, #tpu.memory_space<vmem>>, %arg3: memref<1x128xf32, #tpu.memory_space<vmem>>, %arg4: memref<48x128xf32, #tpu.memory_space<vmem>>) attributes {dimension_semantics = [#tpu.dimension_semantics<parallel>], iteration_bounds = array<i64: 1>, scalar_prefetch = 0 : i64, scratch_operands = 0 : i64, tpu.core_type = #tpu.core_type<tc>, window_params = [{transform_indices = @transform_0, window_bounds = array<i64: 48, 32>}, {pipeline_mode = #tpu.pipeline_mode<synchronous>, transform_indices = @transform_1, window_bounds = array<i64: 32, 128>}, {pipeline_mode = #tpu.pipeline_mode<synchronous>, transform_indices = @transform_2, window_bounds = array<i64: 1, 128>}, {transform_indices = @transform_3, window_bounds = array<i64: 48, 128>}]} {
    %c0 = arith.constant 0 : index
    %c0_0 = arith.constant 0 : index
    %0 = vector.load %arg1[%c0, %c0_0] : memref<48x32xf32, #tpu.memory_space<vmem>>, vector<48x32xf32>
    %c0_1 = arith.constant 0 : index
    %c0_2 = arith.constant 0 : index
    %1 = vector.load %arg2[%c0_1, %c0_2] : memref<32x128xf32, #tpu.memory_space<vmem>>, vector<32x128xf32>
    %cst = arith.constant dense<0.000000e+00> : vector<48x128xf32>
    %2 = tpu.matmul %0, %1, %cst {dimension_numbers = #tpu.dot_dimension_numbers<[1], [0], [0], [1], [0, 0, 1, 1], [], []>} : vector<48x32xf32>, vector<32x128xf32>, vector<48x128xf32> -> vector<48x128xf32>
    %c0_3 = arith.constant 0 : index
    %c0_4 = arith.constant 0 : index
    %3 = vector.load %arg3[%c0_3, %c0_4] : memref<1x128xf32, #tpu.memory_space<vmem>>, vector<1x128xf32>
    %4 = vector.broadcast %3 : vector<1x128xf32> to vector<48x128xf32>
    %5 = arith.addf %2, %4 : vector<48x128xf32>
    %6 = math.sin %5 : vector<48x128xf32>
    %cst_5 = arith.constant 3.000000e+01 : f32
    %7 = vector.broadcast %cst_5 : f32 to vector<48x128xf32>
    %8 = arith.mulf %6, %7 : vector<48x128xf32>
    %c0_6 = arith.constant 0 : index
    %c0_7 = arith.constant 0 : index
    %9 = vector.load %arg4[%c0_6, %c0_7] : memref<48x128xf32, #tpu.memory_space<vmem>>, vector<48x128xf32>
    tpu.vector_store %arg4[%c0_6, %c0_7], %8 {strides = array<i32>} : memref<48x128xf32, #tpu.memory_space<vmem>>, vector<48x128xf32>,
    return
  }
  func.func @transform_0(%arg0: i32) -> (i32, i32) {
    %c0_i32 = arith.constant 0 : i32
    %c0_i32_0 = arith.constant 0 : i32
    return %arg0, %c0_i32 : i32, i32
  }
  func.func @transform_1(%arg0: i32) -> (i32, i32) {
    %c0_i32 = arith.constant 0 : i32
    %c0_i32_0 = arith.constant 0 : i32
    %c0_i32_1 = arith.constant 0 : i32
    return %c0_i32, %c0_i32_0 : i32, i32
  }
  func.func @transform_2(%arg0: i32) -> (i32, i32) {
    %c0_i32 = arith.constant 0 : i32
    %c0_i32_0 = arith.constant 0 : i32
    %c0_i32_1 = arith.constant 0 : i32
    return %c0_i32, %c0_i32_0 : i32, i32
  }
  func.func @transform_3(%arg0: i32) -> (i32, i32) {
    %c0_i32 = arith.constant 0 : i32
    %c0_i32_0 = arith.constant 0 : i32
    return %arg0, %c0_i32 : i32, i32
  }
}

</mosaic_0001>

<bundles_post_ra>
// kernel: tpu_custom_call.1
= control target key start
LH: loop header
LB: loop body
LE: loop exit
PB: predicated region body
PF: predicated region fallthrough
CT: control target
= control target key end

     0   :  { %vm32_vm0 = vcmask 261120   ;;  %s1506_s0 = inlined_call_operand.vmem [shape: f32[48,32], index: 0, kind: input, shape index: {}]   ;;  %s1507_s1 = inlined_call_operand.vmem [shape: f32[32,128], index: 1, kind: input, shape index: {}]   ;;  %s1508_s2 = inlined_call_operand.vmem [shape: f32[1,128], index: 2, kind: input, shape index: {}]   ;;  %s1509_s3 = inlined_call_operand.hbm [shape: f32[48,128], index: 3, kind: output, shape index: {}]  }
   0x1   :  { %v21_v0 = vld [vmem:[%s1507_s1] sm:$0xff]  ;;  %v22_v1 = vld [vmem:[%s1507_s1 + $0x8] sm:$0xff]  ;;  %v23_v2 = vld [vmem:[%s1507_s1 + $0x10] sm:$0xff] }
   0x2   :  { %v856_v3 = vpack.c.bf16 %v22_v1, %v21_v0  ;;  %v24_v4 = vld [vmem:[%s1507_s1 + $0x18] sm:$0xff]  ;;  %v15_v5 = vld [vmem:[%s1506_s0] sm:$0xff]  ;;  %v17_v6 = vld [vmem:[%s1506_s0 + $0x10] sm:$0xff] }
   0x3   :  { %v860_v7 = vpack.c.bf16 %v24_v4, %v23_v2  ;;  %847 = vmatprep.mubr.msk.f32.mxu0 %vm32_vm0, %v15_v5  ;;  %850 = vmatprep.mubr.msk.f32.mxu1 %vm32_vm0, %v17_v6 }
   0x4   :  { %857 = vmatprep.subr.bf16.mxu0 %v856_v3  ;;  %864 = vmatprep.subr.bf16.mxu1 %v856_v3 }
   0x5   :  { %8 = vsyncpa [#allocation3], 0  ;;  %859 = vmatpush3.bf16.msra.mxu0 %v856_v3  ;;  %866 = vmatpush3.bf16.msra.mxu1 %v856_v3  ;;  %v16_v8 = vld [vmem:[%s1506_s0 + $0x8] sm:$0xff]  ;;  %v18_v9 = vld [vmem:[%s1506_s0 + $0x18] sm:$0xff]  ;;  %v949_v50 = vmov 683565275  }
   0x6   :  { %861 = vmatprep.subr.bf16.mxu0 %v860_v7  ;;  %865 = vmatprep.subr.bf16.mxu1 %v860_v7  ;;  %v19_v10 = vld [vmem:[%s1506_s0 + $0x20] sm:$0xff]  ;;  %v20_v11 = vld [vmem:[%s1506_s0 + $0x28] sm:$0xff]  ;;  %v950_v52 = vmov 2475754826   ;;  %v951_v54 = vmov 2131351028  }
   0x7   :  { %v1017_v12 = vld [vmem:[%s1508_s2] ss:$0 sm:$0xff]  ;;  %v952_v56 = vmov 2102212464   ;;  %v953_v58 = vmov 920167782  }
   0x8   :  { %v954_v3 = vmov 1326507024   ;;  %s955_s0 = smov [#allocation2]  }
   0x9   :  { %863 = vmatpush3.bf16.msra.mxu0 %v860_v7  ;;  %867 = vmatpush3.bf16.msra.mxu1 %v860_v7  ;;  %s787_s2 = sshll.u32 %s955_s0, 4  ;;  %s788_s2 = int_to_ptr.vmem [resolvable:$true] %s787_s2 }
   0xa   :  { %s925_s6 = scalar_lea.vmem %s788_s2, 768  ;;  %p930_p1 = scmp.lt.s32.totalorder %s788_s2, %s788_s2 }
   0xb   :  { %p926_p0 = scmp.ne.s32.totalorder %s788_s2, %s925_s6  ;;  %p931_p2 = scmp.lt.s32.totalorder %s925_s6, %s925_s6 }
   0xc   :  { %848 = vmatmul.mubr.msk.f32.vlgmr.msra.gmra.mrb[0].mxu0 %vm32_vm0, %v16_v8  ;;  %851 = vmatmul.mubr.msk.f32.vlgmr.msra.gmra.mrb[0].mxu1 %vm32_vm0, %v18_v9 }
   0xd   :  { %853 = vmatprep.mubr.msk.f32.mxu1 %vm32_vm0, %v19_v10  ;;  %p932_p3 = por %p931_p2, %p930_p1 }
   0xf   :  { %p933_p4 = pnand %p932_p3, %p926_p0 }
  0x10   :  { %854 = vmatmul.mubr.msk.f32.gmra.mrb[2].mxu1 %vm32_vm0, %v20_v11 }
  0xdf   :  { %v849_v13 = vpop.f32.mrb[0].mxu0  ;;  %v852_v14 = vpop.f32.mrb[0].mxu1 }
  0xe0   :  { %v1020_v15 = vadd.f32 %v849_v13, %v1017_v12  ;;  %v1023_v16 = vadd.f32 %v852_v14, %v1017_v12  ;;  %v117_v17 = vpop.f32.mrb[1].mxu0  ;;  %v127_v18 = vpop.f32.mrb[1].mxu1 }
  0xe1   :  { %v1026_v19 = vadd.f32 %v1017_v12, %v117_v17  ;;  %v1045_v44 = vadd.f32 %v1017_v12, %v127_v18 }
  0xe2   :  { %v250_v20 = vand.u32 2147483647, %v1020_v15  ;;  %v253_v21 = vand.u32 2139095040, %v1020_v15  ;;  %v458_v22 = vand.u32 2147483647, %v1023_v16  ;;  %v461_v23 = vand.u32 2139095040, %v1023_v16 }
  0xe3   :  { %v1032_v24 = vpop.f32.mrb[2].mxu1  ;;  %v149_v29 = vand.u32 2139095040, %v1026_v19  ;;  %v146_v38 = vand.u32 2147483647, %v1026_v19  ;;  %vm252_vm13 = vcmp.lt.s32.totalorder %v1020_v15, 0 }
  0xe4   :  { %v254_v25 = vshrl.u32 %v253_v21, 23  ;;  %v257_v26 = vand.u32 8388607, %v250_v20  ;;  %v462_v27 = vshrl.u32 %v461_v23, 23  ;;  %v465_v28 = vand.u32 8388607, %v458_v22 }
  0xe5   :  { %v1039_v31 = vpop.f32.mrb[3].mxu1  ;;  %v150_v33 = vshrl.u32 %v149_v29, 23  ;;  %v1053_v48 = vand.u32 8388607, %v146_v38  ;;  %vm1146_vm15 = vcmp.le.f32.partialorder %v250_v20, 0.7853982 }
  0xe6   :  { %v809_v30 = vadd.s32 4294967169, %v254_v25  ;;  %v817_v32 = vadd.s32 4294967169, %v462_v27  ;;  %v258_v34 = vor.u32 8388608, %v257_v26  ;;  %v466_v36 = vor.u32 8388608, %v465_v28 }
  0xe7   :  { %v805_v40 = vadd.s32 4294967169, %v150_v33 }
  0xe8   :  { %v260_v35 = vadd.s32 1, %v809_v30  ;;  %v468_v37 = vadd.s32 1, %v817_v32  ;;  %v1042_v42 = vshll.u32 %v258_v34, 8  ;;  %v1049_v47 = vshll.u32 %v466_v36, 8 }
  0xe9   :  { %v1062_v61 = vadd.s32 1, %v805_v40 }
  0xea   :  { %vm261_vm1 = vcmp.gt.s32.totalorder %v260_v35, 0  ;;  %vm469_vm2 = vcmp.gt.s32.totalorder %v468_v37, 0 }
  0xeb   :  { %v262_v39 = vsel %vm261_vm1, %v260_v35, 0  ;;  %v470_v43 = vsel %vm469_vm2, %v468_v37, 0  ;;  %vm157_vm7 = vcmp.gt.s32.totalorder %v1062_v61, 0 }
  0xec   :  { %v264_v41 = vand.u32 31, %v262_v39  ;;  %v263_v45 = vshrl.u32 %v262_v39, 5  ;;  %v1047_v46 = vand.u32 31, %v470_v43  ;;  %v1060_v60 = vshrl.u32 %v470_v43, 5 }
  0xee   :  { %v265_v49 = vsub.s32 32, %v264_v41  ;;  %v267_v51 = vshll.u32 %v949_v50, %v264_v41  ;;  %v270_v53 = vshll.u32 %v950_v52, %v264_v41  ;;  %v273_v55 = vshll.u32 %v951_v54, %v264_v41 }
  0xef   :  { %v276_v57 = vshll.u32 %v952_v56, %v264_v41  ;;  %v279_v59 = vshll.u32 %v953_v58, %v264_v41  ;;  %vm282_vm3 = vcmp.lt.s32.totalorder %v263_v45, 1  ;;  %vm283_vm4 = vcmp.lt.s32.totalorder %v263_v45, 2 }
  0xf0   :  { %v266_v62 = vshrl.u32 %v949_v50, %v265_v49  ;;  %v268_v63 = vshrl.u32 %v950_v52, %v265_v49  ;;  %v271_v0 = vshrl.u32 %v951_v54, %v265_v49  ;;  %v274_v1 = vshrl.u32 %v952_v56, %v265_v49 }
  0xf1   :  { %v277_v2 = vshrl.u32 %v953_v58, %v265_v49  ;;  %v280_v4 = vshrl.u32 %v954_v3, %v265_v49  ;;  %v473_v8 = vsub.s32 32, %v1047_v46  ;;  %vm284_vm5 = vcmp.lt.s32.totalorder %v263_v45, 3 }
  0xf2   :  { %v269_v5 = vor.u32 %v268_v63, %v267_v51  ;;  %v272_v6 = vor.u32 %v271_v0, %v270_v53  ;;  %v275_v7 = vor.u32 %v274_v1, %v273_v55  ;;  %vm285_vm6 = vcmp.lt.s32.totalorder %v263_v45, 4 }
  0xf3   :  { %v278_v9 = vor.u32 %v277_v2, %v276_v57  ;;  %v281_v10 = vor.u32 %v280_v4, %v279_v59  ;;  %v475_v25 = vshll.u32 %v949_v50, %v1047_v46  ;;  %v476_v28 = vshrl.u32 %v950_v52, %v473_v8 }
  0xf4   :  { %v286_v11 = vsel %vm282_vm3, %v266_v62, %v269_v5  ;;  %v287_v13 = vsel %vm285_vm6, %v275_v7, 2102212464  ;;  %v290_v14 = vsel %vm282_vm3, %v269_v5, %v272_v6  ;;  %v294_v17 = vsel %vm282_vm3, %v272_v6, %v275_v7 }
  0xf5   :  { %v288_v18 = vsel %vm284_vm5, %v272_v6, %v287_v13  ;;  %v291_v21 = vsel %vm285_vm6, %v278_v9, 920167782  ;;  %v295_v23 = vsel %vm285_vm6, %v281_v10, 1326507024  ;;  %v478_v29 = vshll.u32 %v950_v52, %v1047_v46 }
  0xf6   :  { %v292_v26 = vsel %vm284_vm5, %v275_v7, %v291_v21  ;;  %v296_v27 = vsel %vm284_vm5, %v278_v9, %v295_v23  ;;  %v289_v30 = vsel %vm283_vm4, %v286_v11, %v288_v18  ;;  %v479_v34 = vshrl.u32 %v951_v54, %v473_v8 }
  0xf7   :  { %v293_v32 = vsel %vm283_vm4, %v290_v14, %v292_v26  ;;  %v297_v33 = vsel %vm283_vm4, %v294_v17, %v296_v27  ;;  %v477_v40 = vor.u32 %v476_v28, %v475_v25  ;;  %v481_v43 = vshll.u32 %v951_v54, %v1047_v46 }
  0xf8   :  { %v1082_v35 = vmul.u32.u64.low %v1042_v42, %v297_v33  ;;  %v1083_v36 = vmul.u32.u64.high %v1042_v42, %v297_v33, %v1082_v35  ;;  %v1086_v37 = vmul.u32.u64.low %v1042_v42, %v293_v32  ;;  %v1087_v39 = vmul.u32.u64.high %v1042_v42, %v293_v32, %v1086_v37 }
  0xf9   :  { %v480_v41 = vor.u32 %v479_v34, %v478_v29  ;;  %v482_v49 = vshrl.u32 %v952_v56, %v473_v8  ;;  %v474_v45 = vshrl.u32 %v949_v50, %v473_v8  ;;  %v484_v51 = vshll.u32 %v952_v56, %v1047_v46 }
  0xfa   :  { %v485_v53 = vshrl.u32 %v953_v58, %v473_v8  ;;  %v488_v55 = vshrl.u32 %v954_v3, %v473_v8  ;;  %v305_v57 = vmul.u32 %v1042_v42, %v289_v30  ;;  %v487_v62 = vshll.u32 %v953_v58, %v1047_v46 }
  0xfb   :  { %v483_v59 = vor.u32 %v482_v49, %v481_v43  ;;  %vm490_vm8 = vcmp.lt.s32.totalorder %v1060_v60, 1  ;;  %vm307_vm9 = vc.u32 %v1083_v36, %v1086_v37  ;;  %v308_v63 = vadd.s32 1, %v1087_v39 }
  0xfc   :  { %v486_v0 = vor.u32 %v485_v53, %v484_v51  ;;  %vm491_vm10 = vcmp.lt.s32.totalorder %v1060_v60, 2  ;;  %v489_v1 = vor.u32 %v488_v55, %v487_v62  ;;  %vm492_vm11 = vcmp.lt.s32.totalorder %v1060_v60, 3 }
  0xfd   :  { %vm493_vm12 = vcmp.lt.s32.totalorder %v1060_v60, 4  ;;  %v498_v42 = vsel %vm490_vm8, %v477_v40, %v480_v41  ;;  %v309_v2 = vsel %vm307_vm9, %v308_v63, %v1087_v39  ;;  %v502_v5 = vsel %vm490_vm8, %v480_v41, %v483_v59 }
  0xfe   :  { %v495_v4 = vsel %vm493_vm12, %v483_v59, 2102212464  ;;  %v499_v46 = vsel %vm493_vm12, %v486_v0, 920167782  ;;  %v310_v6 = vadd.s32 %v309_v2, %v305_v57  ;;  %v494_v7 = vsel %vm490_vm8, %v474_v45, %v477_v40 }
  0xff   :  { %v500_v8 = vsel %vm492_vm11, %v483_v59, %v499_v46  ;;  %v503_v9 = vsel %vm493_vm12, %v489_v1, 1326507024  ;;  %v496_v10 = vsel %vm492_vm11, %v480_v41, %v495_v4  ;;  %v158_v14 = vsel %vm157_vm7, %v1062_v61, 0 }
 0x100   :  { %v501_v11 = vsel %vm491_vm10, %v498_v42, %v500_v8  ;;  %v504_v13 = vsel %vm492_vm11, %v486_v0, %v503_v9  ;;  %v311_v17 = vadd.s32 536870912, %v310_v6  ;;  %v154_v27 = vor.u32 8388608, %v1053_v48 }
 0x101   :  { %v505_v18 = vsel %vm491_vm10, %v502_v5, %v504_v13  ;;  %v1117_v21 = vmul.u32.u64.low %v1049_v47, %v501_v11  ;;  %v1118_v23 = vmul.u32.u64.high %v1049_v47, %v501_v11, %v1117_v21  ;;  %v354_v28 = vand.u32 2147483647, %v1045_v44 }
 0x102   :  { %v1122_v25 = vmul.u32.u64.low %v1049_v47, %v505_v18  ;;  %v1123_v26 = vmul.u32.u64.high %v1049_v47, %v505_v18, %v1122_v25  ;;  %v312_v29 = vshrl.u32 %v311_v17, 30  ;;  %v497_v61 = vsel %vm491_vm10, %v494_v7, %v496_v10 }
 0x103   :  { %v160_v30 = vand.u32 31, %v158_v14  ;;  %v357_v32 = vand.u32 2139095040, %v1045_v44  ;;  %v516_v34 = vadd.s32 1, %v1118_v23  ;;  %v513_v39 = vmul.u32 %v1049_v47, %v497_v61 }
 0x104   :  { %v313_v33 = vshll.u32 %v312_v29, 30  ;;  %vm515_vm14 = vc.u32 %v1123_v26, %v1117_v21  ;;  %v1137_v48 = vand.u32 8388607, %v354_v28  ;;  %v1142_v41 = vshll.u32 %v154_v27, 8 }
 0x105   :  { %v161_v35 = vsub.s32 32, %v160_v30  ;;  %v517_v40 = vsel %vm515_vm14, %v516_v34, %v1118_v23  ;;  %v358_v43 = vshrl.u32 %v357_v32, 23  ;;  %v163_v45 = vshll.u32 %v949_v50, %v160_v30 }
 0x106   :  { %v1139_v60 = vsub.s32 %v310_v6, %v313_v33  ;;  %v518_v47 = vadd.s32 %v517_v40, %v513_v39  ;;  %v166_v53 = vshll.u32 %v950_v52, %v160_v30  ;;  %v169_v59 = vshll.u32 %v951_v54, %v160_v30 }
 0x107   :  { %v164_v51 = vshrl.u32 %v950_v52, %v161_v35  ;;  %v167_v57 = vshrl.u32 %v951_v54, %v161_v35  ;;  %v170_v62 = vshrl.u32 %v952_v56, %v161_v35  ;;  %v336_v63 = vsub.s32 4, %v312_v29 }
 0x108   :  { %v316_v55 = vsub.s32 0, %v1139_v60  ;;  %v519_v20 = vadd.s32 536870912, %v518_v47  ;;  %v1157_v0 = vshrl.u32 %v158_v14, 5  ;;  %v172_v1 = vshll.u32 %v952_v56, %v160_v30 }
 0x109   :  { %v306_v42 = vadd.s32 %v1086_v37, %v1083_v36  ;;  %v173_v4 = vshrl.u32 %v953_v58, %v161_v35  ;;  %v813_v46 = vadd.s32 4294967169, %v358_v43  ;;  %v175_v6 = vshll.u32 %v953_v58, %v160_v30 }
 0x10a   :  { %v810_v2 = vmin.u32 %v316_v55, %v1139_v60  ;;  %v520_v5 = vshrl.u32 %v519_v20, 30  ;;  %v176_v7 = vshrl.u32 %v954_v3, %v161_v35  ;;  %v362_v8 = vor.u32 8388608, %v1137_v48 }
 0x10b   :  { %v165_v10 = vor.u32 %v164_v51, %v163_v45  ;;  %v168_v11 = vor.u32 %v167_v57, %v166_v53  ;;  %v171_v13 = vor.u32 %v170_v62, %v169_v59  ;;  %v337_v14 = vsel %vm252_vm13, %v336_v63, %v312_v29 }
 0x10c   :  { %v318_v9 = vclz %v810_v2  ;;  %v521_v36 = vshll.u32 %v520_v5, 30  ;;  %v174_v37 = vor.u32 %v173_v4, %v172_v1  ;;  %vm178_vm0 = vcmp.lt.s32.totalorder %v1157_v0, 1 }
 0x10d   :  { %v177_v18 = vor.u32 %v176_v7, %v175_v6  ;;  %vm179_vm1 = vcmp.lt.s32.totalorder %v1157_v0, 2  ;;  %vm181_vm2 = vcmp.lt.s32.totalorder %v1157_v0, 4  ;;  %vm460_vm3 = vcmp.lt.s32.totalorder %v1023_v16, 0 }
 0x10e   :  { %v811_v17 = vadd.s32 4294967294, %v318_v9  ;;  %v1173_v23 = vsub.s32 %v518_v47, %v521_v36  ;;  %v162_v25 = vshrl.u32 %v949_v50, %v161_v35  ;;  %vm180_vm4 = vcmp.lt.s32.totalorder %v1157_v0, 3 }
 0x10f   :  { %v187_v27 = vsel %vm181_vm2, %v174_v37, 920167782  ;;  %v339_v29 = vsel %vm1146_vm15, 0, %v337_v14  ;;  %v186_v61 = vsel %vm178_vm0, %v165_v10, %v168_v11  ;;  %v544_v34 = vsub.s32 4, %v520_v5 }
 0x110   :  { %vm812_vm5 = vcmp.lt.s32.totalorder %v811_v17, 0  ;;  %v188_v30 = vsel %vm180_vm4, %v171_v13, %v187_v27  ;;  %v524_v33 = vsub.s32 0, %v1173_v23  ;;  %v190_v35 = vsel %vm178_vm0, %v168_v11, %v171_v13 }
 0x111   :  { %v321_v32 = vsel %vm812_vm5, 0, %v811_v17  ;;  %vm1190_vm6 = vcmp.le.f32.partialorder %v458_v22, 0.7853982  ;;  %v183_v47 = vsel %vm181_vm2, %v171_v13, 2102212464  ;;  %v189_v55 = vsel %vm179_vm1, %v186_v61, %v188_v30 }
 0x112   :  { %v322_v39 = vsub.s32 32, %v321_v32  ;;  %v326_v40 = vsub.s32 4294967266, %v321_v32  ;;  %v191_v45 = vsel %vm181_vm2, %v177_v18, 1326507024  ;;  %v323_v51 = vshll.u32 %v1139_v60, %v321_v32 }
 0x113   :  { %v818_v53 = vmin.u32 %v524_v33, %v1173_v23  ;;  %v192_v57 = vsel %vm180_vm4, %v174_v37, %v191_v45  ;;  %v364_v63 = vadd.s32 1, %v813_v46  ;;  %v343_v20 = vadd.s32 3, %v339_v29 }
 0x114   :  { %v324_v22 = vshrl.u32 %v306_v42, %v322_v39  ;;  %v327_v59 = vadd.s32 127, %v326_v40  ;;  %v193_v62 = vsel %vm179_vm1, %v190_v35, %v192_v57  ;;  %v182_v2 = vsel %vm178_vm0, %v162_v25, %v165_v10 }
 0x115   :  { %v526_v1 = vclz %v818_v53  ;;  %v184_v60 = vsel %vm180_vm4, %v168_v11, %v183_v47  ;;  %v1211_v7 = vmul.u32.u64.low %v1142_v41, %v193_v62  ;;  %v1212_v9 = vmul.u32.u64.high %v1142_v41, %v193_v62, %v1211_v7 }
 0x116   :  { %v325_v4 = vor.u32 %v324_v22, %v323_v51  ;;  %v328_v6 = vshll.u32 %v327_v59, 23  ;;  %v1215_v13 = vmul.u32.u64.low %v1142_v41, %v189_v55  ;;  %v1216_v14 = vmul.u32.u64.high %v1142_v41, %v189_v55, %v1215_v13 }
 0x117   :  { %v819_v42 = vadd.s32 4294967294, %v526_v1  ;;  %vm365_vm7 = vcmp.gt.s32.totalorder %v364_v63, 0  ;;  %v514_v10 = vadd.s32 %v1117_v21, %v1123_v26  ;;  %v545_v11 = vsel %vm460_vm3, %v544_v34, %v520_v5 }
 0x118   :  { %v329_v46 = vor.u32 4788187, %v328_v6  ;;  %v366_v36 = vsel %vm365_vm7, %v364_v63, 0  ;;  %v1223_v37 = vand.u32 3, %v343_v20  ;;  %v185_v17 = vsel %vm179_vm1, %v182_v2, %v184_v60 }
 0x119   :  { %vm820_vm8 = vcmp.lt.s32.totalorder %v819_v42, 0  ;;  %v368_v18 = vand.u32 31, %v366_v36  ;;  %v332_v27 = vcvt.s32.f32 %v325_v4  ;;  %vm203_vm9 = vc.u32 %v1212_v9, %v1215_v13 }
 0x11a   :  { %v330_v25 = vand.u32 2147483647, %v329_v46  ;;  %v529_v29 = vsel %vm820_vm8, 0, %v819_v42  ;;  %v547_v21 = vsel %vm1190_vm6, 0, %v545_v11  ;;  %v204_v26 = vadd.s32 1, %v1216_v14 }
 0x11b   :  { %v530_v61 = vsub.s32 32, %v529_v29  ;;  %v534_v30 = vsub.s32 4294967266, %v529_v29  ;;  %v201_v32 = vmul.u32 %v1142_v41, %v185_v17  ;;  %v1233_v33 = vshrl.u32 %v366_v36, 5 }
 0x11c   :  { %v333_v5 = vmul.f32 %v332_v27, %v330_v25  ;;  %v369_v0 = vsub.s32 32, %v368_v18  ;;  %v531_v34 = vshll.u32 %v1173_v23, %v529_v29  ;;  %v205_v40 = vsel %vm203_vm9, %v204_v26, %v1216_v14 }
 0x11d   :  { %v532_v35 = vshrl.u32 %v514_v10, %v530_v61  ;;  %v535_v39 = vadd.s32 127, %v534_v30  ;;  %v206_v45 = vadd.s32 %v205_v40, %v201_v32  ;;  %v371_v51 = vshll.u32 %v949_v50, %v368_v18 }
 0x11e   :  { %v334_v47 = vxor.u32 2147483648, %v333_v5  ;;  %v372_v53 = vshrl.u32 %v950_v52, %v369_v0  ;;  %v374_v22 = vshll.u32 %v950_v52, %v368_v18  ;;  %v375_v41 = vshrl.u32 %v951_v54, %v369_v0 }
 0x11f   :  { %v533_v55 = vor.u32 %v532_v35, %v531_v34  ;;  %v536_v57 = vshll.u32 %v535_v39, 23  ;;  %v207_v23 = vadd.s32 536870912, %v206_v45  ;;  %v377_v62 = vshll.u32 %v951_v54, %v368_v18 }
 0x120   :  { %v335_v59 = vsel %vm252_vm13, %v334_v47, %v333_v5  ;;  %v378_v63 = vshrl.u32 %v952_v56, %v369_v0  ;;  %v373_v2 = vor.u32 %v372_v53, %v371_v51  ;;  %v380_v60 = vshll.u32 %v952_v56, %v368_v18 }
 0x121   :  { %v338_v20 = vsel %vm1146_vm15, %v1020_v15, %v335_v59  ;;  %v537_v1 = vor.u32 4788187, %v536_v57  ;;  %v540_v4 = vcvt.s32.f32 %v533_v55  ;;  %v1249_v6 = vshrl.u32 %v207_v23, 30 }
 0x122   :  { %901 = vcosq.f32 %v338_v20  ;;  %v381_v7 = vshrl.u32 %v953_v58, %v369_v0  ;;  %v376_v14 = vor.u32 %v375_v41, %v374_v22  ;;  %v384_v46 = vshrl.u32 %v954_v3, %v369_v0 }
 0x123   :  { %903 = vsinq.f32 %v338_v20  ;;  %v538_v42 = vand.u32 2147483647, %v537_v1  ;;  %v209_v10 = vshll.u32 %v1249_v6, 30  ;;  %v379_v36 = vor.u32 %v378_v63, %v377_v62 }
 0x124   :  { %v382_v11 = vor.u32 %v381_v7, %v380_v60  ;;  %v383_v17 = vshll.u32 %v953_v58, %v368_v18  ;;  %vm349_vm10 = vcmp.eq.s32.totalorder %v1223_v37, 2  ;;  %v551_v25 = vadd.s32 3, %v547_v21 }
 0x125   :  { %v541_v49 = vmul.f32 %v540_v4, %v538_v42  ;;  %v1256_v27 = vsub.s32 %v206_v45, %v209_v10  ;;  %vm386_vm11 = vcmp.lt.s32.totalorder %v1233_v33, 1  ;;  %v1261_v29 = vshll.u32 %v362_v8, 8 }
 0x126   :  { %vm346_vm12 = vcmp.eq.s32.totalorder %v1223_v37, 0  ;;  %v385_v30 = vor.u32 %v384_v46, %v383_v17  ;;  %vm389_vm13 = vcmp.lt.s32.totalorder %v1233_v33, 4  ;;  %v394_v18 = vsel %vm386_vm11, %v373_v2, %v376_v14 }
 0x127   :  { %v542_v61 = vxor.u32 2147483648, %v541_v49  ;;  %vm345_vm14 = vcmp.lt.s32.totalorder %v1223_v37, 2  ;;  %vm148_vm15 = vcmp.lt.s32.totalorder %v1026_v19, 0  ;;  %v212_v21 = vsub.s32 0, %v1256_v27 }
 0x128   :  { %v370_v26 = vshrl.u32 %v949_v50, %v369_v0  ;;  %vm388_vm0 = vcmp.lt.s32.totalorder %v1233_v33, 3  ;;  %v395_v48 = vsel %vm389_vm13, %v382_v11, 920167782  ;;  %vm342_vm1 = vweird.f32 %v1020_v15 }
 0x129   :  { %v543_v8 = vsel %vm460_vm3, %v542_v61, %v541_v49  ;;  %vm387_vm2 = vcmp.lt.s32.totalorder %v1233_v33, 2  ;;  %v391_v5 = vsel %vm389_vm13, %v379_v36, 2102212464  ;;  %v396_v32 = vsel %vm388_vm0, %v379_v36, %v395_v48 }
 0x12a   :  { %v546_v0 = vsel %vm1190_vm6, %v1023_v16, %v543_v8  ;;  %v806_v34 = vmin.u32 %v212_v21, %v1256_v27  ;;  %v397_v35 = vsel %vm387_vm2, %v394_v18, %v396_v32  ;;  %v398_v39 = vsel %vm386_vm11, %v376_v14, %v379_v36 }
 0x12b   :  { %905 = vcosq.f32 %v546_v0  ;;  %v399_v40 = vsel %vm389_vm13, %v385_v30, 1326507024  ;;  %v1293_v47 = vmul.u32.u64.low %v1261_v29, %v397_v35  ;;  %v1294_v45 = vmul.u32.u64.high %v1261_v29, %v397_v35, %v1293_v47 }
 0x12c   :  { %v902_v51 = vpop.eup %901  ;;  %907 = vsinq.f32 %v546_v0  ;;  %v214_v43 = vclz %v806_v34  ;;  %v390_v53 = vsel %vm386_vm11, %v370_v26, %v373_v2  ;;  %v392_v55 = vsel %vm388_vm0, %v376_v14, %v391_v5 }
 0x12d   :  { %v904_v57 = vpop.eup %903  ;;  %v350_v22 = vxor.u32 2147483648, %v902_v51  ;;  %v552_v41 = vand.u32 3, %v551_v25  ;;  %v232_v59 = vsub.s32 4, %v1249_v6  ;;  %v400_v23 = vsel %vm388_vm0, %v382_v11, %v399_v40 }
 0x12e   :  { %v347_v62 = vxor.u32 2147483648, %v904_v57  ;;  %v807_v63 = vadd.s32 4294967294, %v214_v43  ;;  %v401_v20 = vsel %vm387_vm2, %v398_v39, %v400_v23  ;;  %v1308_v1 = vadd.f32 %v1032_v24, %v1017_v12 }
 0x12f   :  { %v351_v2 = vsel %vm349_vm10, %v350_v22, %v904_v57  ;;  %v393_v60 = vsel %vm387_vm2, %v390_v53, %v392_v55  ;;  %v1315_v4 = vmul.u32.u64.low %v1261_v29, %v401_v20  ;;  %v1316_v7 = vmul.u32.u64.high %v1261_v29, %v401_v20, %v1315_v4 }
 0x130   :  { %v348_v42 = vsel %vm346_vm12, %v902_v51, %v347_v62  ;;  %v202_v14 = vadd.s32 %v1215_v13, %v1212_v9  ;;  %vm808_vm3 = vcmp.lt.s32.totalorder %v807_v63, 0  ;;  %v412_v24 = vadd.s32 1, %v1294_v45 }
 0x131   :  { %v352_v46 = vsel %vm345_vm14, %v348_v42, %v351_v2  ;;  %v217_v10 = vsel %vm808_vm3, 0, %v807_v63  ;;  %v233_v33 = vsel %vm148_vm15, %v232_v59, %v1249_v6  ;;  %v669_v11 = vand.u32 2139095040, %v1308_v1 }
 0x132   :  { %v353_v49 = vsel %vm342_vm1, nan, %v352_v46  ;;  %v218_v36 = vsub.s32 32, %v217_v10  ;;  %v222_v17 = vsub.s32 4294967266, %v217_v10  ;;  %v409_v9 = vmul.u32 %v1261_v29, %v393_v60 }
 0x133   :  { %v771_v13 = vmul.f32 30.0, %v353_v49  ;;  %v219_v25 = vshll.u32 %v1256_v27, %v217_v10  ;;  %vm411_vm4 = vc.u32 %v1316_v7, %v1293_v47  ;;  %v666_v37 = vand.u32 2147483647, %v1308_v1 }
 0x134   :  { %v220_v61 = vshrl.u32 %v202_v14, %v218_v36  ;;  %v223_v30 = vadd.s32 127, %v222_v17  ;;  %v413_v6 = vsel %vm411_vm4, %v412_v24, %v1294_v45  ;;  %v670_v18 = vshrl.u32 %v669_v11, 23 }
 0x135   :  { %v906_v21 = vpop.eup %905  ;;  %777 = vst [vmem:[#allocation2 + $0x8] sm:$0xff] %v771_v13  ;;  %vm554_vm5 = vcmp.eq.s32.totalorder %v552_v41, 0  ;;  %vm1339_vm6 = vcmp.le.f32.partialorder %v146_v38, 0.7853982  ;;  %v414_v27 = vadd.s32 %v413_v6, %v409_v9  ;;  %vm557_vm7 = vcmp.eq.s32.totalorder %v552_v41, 2 }
 0x136   :  { %v908_v29 = vpop.eup %907  ;;  %v558_v26 = vxor.u32 2147483648, %v906_v21  ;;  %v221_v48 = vor.u32 %v220_v61, %v219_v25  ;;  %v224_v8 = vshll.u32 %v223_v30, 23  ;;  %v825_v5 = vadd.s32 4294967169, %v670_v18 }
 0x137   :  { %v555_v32 = vxor.u32 2147483648, %v908_v29  ;;  %v235_v0 = vsel %vm1339_vm6, 0, %v233_v33  ;;  %v415_v34 = vadd.s32 536870912, %v414_v27  ;;  %v673_v38 = vand.u32 8388607, %v666_v37 }
 0x138   :  { %v559_v35 = vsel %vm557_vm7, %v558_v26, %v908_v29  ;;  %v225_v39 = vor.u32 4788187, %v224_v8  ;;  %v676_v40 = vadd.s32 1, %v825_v5  ;;  %vm550_vm8 = vweird.f32 %v1023_v16 }
 0x139   :  { %vm553_vm9 = vcmp.lt.s32.totalorder %v552_v41, 2  ;;  %v556_v45 = vsel %vm554_vm5, %v906_v21, %v555_v32  ;;  %v1349_v51 = vshrl.u32 %v415_v34, 30  ;;  %v228_v55 = vcvt.s32.f32 %v221_v48 }
 0x13a   :  { %v560_v43 = vsel %vm553_vm9, %v556_v45, %v559_v35  ;;  %v226_v53 = vand.u32 2147483647, %v225_v39  ;;  %vm677_vm10 = vcmp.gt.s32.totalorder %v676_v40, 0  ;;  %v239_v22 = vadd.s32 3, %v235_v0 }
 0x13b   :  { %v561_v57 = vsel %vm550_vm8, nan, %v560_v43  ;;  %v417_v59 = vshll.u32 %v1349_v51, 30  ;;  %v678_v23 = vsel %vm677_vm10, %v676_v40, 0  ;;  %v674_v20 = vor.u32 8388608, %v673_v38 }
 0x13c   :  { %v773_v62 = vmul.f32 30.0, %v561_v57  ;;  %v229_v63 = vmul.f32 %v228_v55, %v226_v53  ;;  %v680_v2 = vand.u32 31, %v678_v23  ;;  %v1354_v4 = vand.u32 3, %v239_v22 }
 0x13d   :  { %v1352_v60 = vsub.s32 %v414_v27, %v417_v59  ;;  %v410_v42 = vadd.s32 %v1293_v47, %v1316_v7  ;;  %v1361_v24 = vadd.f32 %v1017_v12, %v1039_v31  ;;  %v1367_v11 = vshll.u32 %v674_v20, 8 }
 0x13e   :  { %779 = vst [vmem:[#allocation2 + $0x18] sm:$0xff] %v773_v62  ;;  %v230_v16 = vxor.u32 2147483648, %v229_v63  ;;  %v681_v41 = vsub.s32 32, %v680_v2  ;;  %v683_v7 = vshll.u32 %v949_v50, %v680_v2  ;;  %v679_v31 = vshrl.u32 %v678_v23, 5 }
 0x13f   :  { %v420_v14 = vsub.s32 0, %v1352_v60  ;;  %v686_v36 = vshll.u32 %v950_v52, %v680_v2  ;;  %v689_v17 = vshll.u32 %v951_v54, %v680_v2  ;;  %v565_v25 = vand.u32 2139095040, %v1361_v24 }
 0x140   :  { %v231_v46 = vsel %vm148_vm15, %v230_v16, %v229_v63  ;;  %v684_v10 = vshrl.u32 %v950_v52, %v681_v41  ;;  %v687_v33 = vshrl.u32 %v951_v54, %v681_v41  ;;  %v690_v12 = vshrl.u32 %v952_v56, %v681_v41 }
 0x141   :  { %v234_v49 = vsel %vm1339_vm6, %v1026_v19, %v231_v46  ;;  %v814_v47 = vmin.u32 %v420_v14, %v1352_v60  ;;  %v692_v6 = vshll.u32 %v952_v56, %v680_v2  ;;  %v693_v18 = vshrl.u32 %v953_v58, %v681_v41 }
 0x142   :  { %909 = vcosq.f32 %v234_v49  ;;  %v685_v13 = vor.u32 %v684_v10, %v683_v7  ;;  %v688_v61 = vor.u32 %v687_v33, %v686_v36  ;;  %v691_v30 = vor.u32 %v690_v12, %v689_v17 }
 0x143   :  { %911 = vsinq.f32 %v234_v49  ;;  %v422_v9 = vclz %v814_v47  ;;  %v682_v15 = vshrl.u32 %v949_v50, %v681_v41  ;;  %v695_v27 = vshll.u32 %v953_v58, %v680_v2 }
 0x144   :  { %v696_v29 = vshrl.u32 %v954_v3, %v681_v41  ;;  %v694_v26 = vor.u32 %v693_v18, %v692_v6  ;;  %vm698_vm11 = vcmp.lt.s32.totalorder %v679_v31, 1  ;;  %vm699_vm12 = vcmp.lt.s32.totalorder %v679_v31, 2 }
 0x145   :  { %v815_v21 = vadd.s32 4294967294, %v422_v9  ;;  %vm701_vm13 = vcmp.lt.s32.totalorder %v679_v31, 4  ;;  %vm242_vm14 = vcmp.eq.s32.totalorder %v1354_v4, 0  ;;  %vm700_vm0 = vcmp.lt.s32.totalorder %v679_v31, 3 }
 0x146   :  { %v697_v48 = vor.u32 %v696_v29, %v695_v27  ;;  %v703_v8 = vsel %vm701_vm13, %v691_v30, 2102212464  ;;  %vm241_vm1 = vcmp.lt.s32.totalorder %v1354_v4, 2  ;;  %v702_v32 = vsel %vm698_vm11, %v682_v15, %v685_v13 }
 0x147   :  { %vm816_vm15 = vcmp.lt.s32.totalorder %v815_v21, 0  ;;  %v706_v0 = vsel %vm698_vm11, %v685_v13, %v688_v61  ;;  %v707_v34 = vsel %vm701_vm13, %v694_v26, 920167782  ;;  %vm238_vm2 = vweird.f32 %v1026_v19 }
 0x148   :  { %v425_v5 = vsel %vm816_vm15, 0, %v815_v21  ;;  %v704_v38 = vsel %vm700_vm0, %v688_v61, %v703_v8  ;;  %v710_v40 = vsel %vm698_vm11, %v688_v61, %v691_v30  ;;  %v708_v43 = vsel %vm700_vm0, %v691_v30, %v707_v34 }
 0x149   :  { %v426_v35 = vsub.s32 32, %v425_v5  ;;  %v430_v39 = vsub.s32 4294967266, %v425_v5  ;;  %v427_v45 = vshll.u32 %v1352_v60, %v425_v5  ;;  %v711_v53 = vsel %vm701_vm13, %v697_v48, 1326507024 }
 0x14a   :  { %v566_v55 = vshrl.u32 %v565_v25, 23  ;;  %v709_v59 = vsel %vm699_vm12, %v706_v0, %v708_v43  ;;  %v712_v23 = vsel %vm700_vm0, %v694_v26, %v711_v53  ;;  %vm245_vm3 = vcmp.eq.s32.totalorder %v1354_v4, 2 }
 0x14b   :  { %v428_v57 = vshrl.u32 %v410_v42, %v426_v35  ;;  %v431_v22 = vadd.s32 127, %v430_v39  ;;  %v713_v63 = vsel %vm699_vm12, %v710_v40, %v712_v23  ;;  %v705_v12 = vsel %vm699_vm12, %v702_v32, %v704_v38 }
 0x14c   :  { %v910_v62 = vpop.eup %909  ;;  %v1399_v20 = vmul.u32.u64.low %v1367_v11, %v709_v59  ;;  %v1400_v2 = vmul.u32.u64.high %v1367_v11, %v709_v59, %v1399_v20  ;;  %v821_v60 = vadd.s32 4294967169, %v566_v55  ;;  %v562_v36 = vand.u32 2147483647, %v1361_v24 }
 0x14d   :  { %v912_v16 = vpop.eup %911  ;;  %v246_v41 = vxor.u32 2147483648, %v910_v62  ;;  %v429_v14 = vor.u32 %v428_v57, %v427_v45  ;;  %v432_v42 = vshll.u32 %v431_v22, 23  ;;  %v440_v9 = vsub.s32 4, %v1349_v51 }
 0x14e   :  { %v243_v46 = vxor.u32 2147483648, %v912_v16  ;;  %v1405_v10 = vmul.u32.u64.low %v1367_v11, %v713_v63  ;;  %v1406_v33 = vmul.u32.u64.high %v1367_v11, %v713_v63, %v1405_v10  ;;  %v572_v49 = vadd.s32 1, %v821_v60 }
 0x14f   :  { %v247_v47 = vsel %vm245_vm3, %v246_v41, %v912_v16  ;;  %v433_v7 = vor.u32 4788187, %v432_v42  ;;  %v724_v13 = vadd.s32 1, %v1400_v2  ;;  %v436_v30 = vcvt.s32.f32 %v429_v14 }
 0x150   :  { %v244_v17 = vsel %vm242_vm14, %v910_v62, %v243_v46  ;;  %vm573_vm4 = vcmp.gt.s32.totalorder %v572_v49, 0  ;;  %vm356_vm5 = vcmp.lt.s32.totalorder %v1045_v44, 0  ;;  %v721_v18 = vmul.u32 %v1367_v11, %v705_v12 }
 0x151   :  { %v248_v25 = vsel %vm241_vm1, %v244_v17, %v247_v47  ;;  %v434_v61 = vand.u32 2147483647, %v433_v7  ;;  %v574_v6 = vsel %vm573_vm4, %v572_v49, 0  ;;  %vm723_vm6 = vc.u32 %v1406_v33, %v1399_v20 }
 0x152   :  { %v249_v31 = vsel %vm238_vm2, nan, %v248_v25  ;;  %v725_v27 = vsel %vm723_vm6, %v724_v13, %v1400_v2  ;;  %v576_v29 = vand.u32 31, %v574_v6  ;;  %vm1425_vm7 = vcmp.le.f32.partialorder %v354_v28, 0.7853982 }
 0x153   :  { %v770_v21 = vmul.f32 30.0, %v249_v31  ;;  %v437_v15 = vmul.f32 %v436_v30, %v434_v61  ;;  %v441_v19 = vsel %vm356_vm5, %v440_v9, %v1349_v51  ;;  %v726_v26 = vadd.s32 %v725_v27, %v721_v18 }
 0x154   :  { %v569_v11 = vand.u32 8388607, %v562_v36  ;;  %v575_v8 = vshrl.u32 %v574_v6, 5  ;;  %v577_v5 = vsub.s32 32, %v576_v29  ;;  %v579_v32 = vshll.u32 %v949_v50, %v576_v29 }
 0x155   :  { %776 = vst [vmem:[#allocation2] sm:$0xff] %v770_v21  ;;  %v438_v48 = vxor.u32 2147483648, %v437_v15  ;;  %v727_v0 = vadd.s32 536870912, %v726_v26  ;;  %v582_v28 = vshll.u32 %v950_v52, %v576_v29  ;;  %v585_v34 = vshll.u32 %v951_v54, %v576_v29 }
 0x156   :  { %v588_v35 = vshll.u32 %v952_v56, %v576_v29  ;;  %v580_v39 = vshrl.u32 %v950_v52, %v577_v5  ;;  %v583_v38 = vshrl.u32 %v951_v54, %v577_v5  ;;  %v591_v40 = vshll.u32 %v953_v58, %v576_v29 }
 0x157   :  { %v439_v51 = vsel %vm356_vm5, %v438_v48, %v437_v15  ;;  %v1446_v43 = vshrl.u32 %v727_v0, 30  ;;  %v586_v53 = vshrl.u32 %v952_v56, %v577_v5  ;;  %v589_v55 = vshrl.u32 %v953_v58, %v577_v5 }
 0x158   :  { %v442_v45 = vsel %vm1425_vm7, %v1045_v44, %v439_v51  ;;  %v581_v57 = vor.u32 %v580_v39, %v579_v32  ;;  %v584_v22 = vor.u32 %v583_v38, %v582_v28  ;;  %v592_v59 = vshrl.u32 %v954_v3, %v577_v5 }
 0x159   :  { %913 = vcosq.f32 %v442_v45  ;;  %v443_v52 = vsel %vm1425_vm7, 0, %v441_v19  ;;  %v729_v54 = vshll.u32 %v1446_v43, 30  ;;  %v587_v23 = vor.u32 %v586_v53, %v585_v34 }
 0x15a   :  { %915 = vsinq.f32 %v442_v45  ;;  %v570_v62 = vor.u32 8388608, %v569_v11  ;;  %v590_v63 = vor.u32 %v589_v55, %v588_v35  ;;  %v593_v2 = vor.u32 %v592_v59, %v591_v40 }
 0x15b   :  { %vm594_vm8 = vcmp.lt.s32.totalorder %v575_v8, 1  ;;  %v730_v60 = vsub.s32 %v726_v26, %v729_v54  ;;  %vm597_vm9 = vcmp.lt.s32.totalorder %v575_v8, 4  ;;  %v447_v58 = vadd.s32 3, %v443_v52 }
 0x15c   :  { %v602_v56 = vsel %vm594_vm8, %v581_v57, %v584_v22  ;;  %vm596_vm10 = vcmp.lt.s32.totalorder %v575_v8, 3  ;;  %v603_v16 = vsel %vm597_vm9, %v590_v63, 920167782  ;;  %vm595_vm11 = vcmp.lt.s32.totalorder %v575_v8, 2 }
 0x15d   :  { %v732_v41 = vsub.s32 0, %v730_v60  ;;  %v604_v3 = vsel %vm596_vm10, %v587_v23, %v603_v16  ;;  %v606_v14 = vsel %vm594_vm8, %v584_v22, %v587_v23  ;;  %v599_v42 = vsel %vm597_vm9, %v587_v23, 2102212464 }
 0x15e   :  { %v605_v46 = vsel %vm595_vm11, %v602_v56, %v604_v3  ;;  %v607_v10 = vsel %vm597_vm9, %v593_v2, 1326507024  ;;  %v610_v49 = vshll.u32 %v570_v62, 8  ;;  %v578_v7 = vshrl.u32 %v949_v50, %v577_v5 }
 0x15f   :  { %v826_v47 = vmin.u32 %v732_v41, %v730_v60  ;;  %v608_v12 = vsel %vm596_vm10, %v590_v63, %v607_v10  ;;  %v448_v17 = vand.u32 3, %v447_v58  ;;  %v600_v6 = vsel %vm596_vm10, %v584_v22, %v599_v42 }
 0x160   :  { %v609_v9 = vsel %vm595_vm11, %v606_v14, %v608_v12  ;;  %v1461_v13 = vmul.u32.u64.low %v610_v49, %v605_v46  ;;  %v1462_v25 = vmul.u32.u64.high %v610_v49, %v605_v46, %v1461_v13  ;;  %v598_v30 = vsel %vm594_vm8, %v578_v7, %v581_v57 }
 0x161   :  { %v734_v61 = vclz %v826_v47  ;;  %v1467_v18 = vmul.u32.u64.low %v610_v49, %v609_v9  ;;  %v1468_v21 = vmul.u32.u64.high %v610_v49, %v609_v9, %v1467_v18  ;;  %vm446_vm12 = vweird.f32 %v1045_v44 }
 0x162   :  { %vm453_vm13 = vcmp.eq.s32.totalorder %v448_v17, 2  ;;  %v601_v4 = vsel %vm595_vm11, %v598_v30, %v600_v6  ;;  %v620_v19 = vadd.s32 1, %v1462_v25  ;;  %vm449_vm14 = vcmp.lt.s32.totalorder %v448_v17, 2 }
 0x163   :  { %v914_v31 = vpop.eup %913  ;;  %v827_v27 = vadd.s32 4294967294, %v734_v61  ;;  %vm450_vm15 = vcmp.eq.s32.totalorder %v448_v17, 0  ;;  %v722_v48 = vadd.s32 %v1399_v20, %v1406_v33  ;;  %vm619_vm1 = vc.u32 %v1468_v21, %v1461_v13 }
 0x164   :  { %v916_v15 = vpop.eup %915  ;;  %v454_v50 = vxor.u32 2147483648, %v914_v31  ;;  %v617_v34 = vmul.u32 %v610_v49, %v601_v4  ;;  %v621_v51 = vsel %vm619_vm1, %v620_v19, %v1462_v25  ;;  %v752_v44 = vsub.s32 4, %v1446_v43 }
 0x165   :  { %v451_v29 = vxor.u32 2147483648, %v916_v15  ;;  %vm828_vm0 = vcmp.lt.s32.totalorder %v827_v27, 0  ;;  %vm668_vm2 = vcmp.lt.s32.totalorder %v1308_v1, 0  ;;  %vm667_vm3 = vcmp.le.f32.partialorder %v666_v37, 0.7853982 }
 0x166   :  { %v455_v26 = vsel %vm453_vm13, %v454_v50, %v916_v15  ;;  %v737_v5 = vsel %vm828_vm0, 0, %v827_v27  ;;  %v622_v45 = vadd.s32 %v621_v51, %v617_v34  ;;  %v618_v46 = vadd.s32 %v1461_v13, %v1468_v21 }
 0x167   :  { %v452_v11 = vsel %vm450_vm15, %v914_v31, %v451_v29  ;;  %v738_v0 = vsub.s32 32, %v737_v5  ;;  %v742_v28 = vsub.s32 4294967266, %v737_v5  ;;  %v739_v35 = vshll.u32 %v730_v60, %v737_v5 }
 0x168   :  { %v456_v32 = vsel %vm449_vm14, %v452_v11, %v455_v26  ;;  %v623_v53 = vadd.s32 536870912, %v622_v45  ;;  %v753_v60 = vsel %vm668_vm2, %v752_v44, %v1446_v43  ;;  %vm758_vm8 = vweird.f32 %v1308_v1 }
 0x169   :  { %v457_v8 = vsel %vm446_vm12, nan, %v456_v32  ;;  %v740_v38 = vshrl.u32 %v722_v48, %v738_v0  ;;  %v743_v40 = vadd.s32 127, %v742_v28  ;;  %v755_v41 = vsel %vm667_vm3, 0, %v753_v60 }
 0x16a   :  { %v772_v39 = vmul.f32 30.0, %v457_v8  ;;  %v624_v57 = vshrl.u32 %v623_v53, 30  ;;  %v759_v14 = vadd.s32 3, %v755_v41  ;;  %vm564_vm9 = vcmp.lt.s32.totalorder %v1361_v24, 0 }
 0x16b   :  { %v741_v20 = vor.u32 %v740_v38, %v739_v35  ;;  %v744_v33 = vshll.u32 %v743_v40, 23  ;;  %vm563_vm10 = vcmp.le.f32.partialorder %v562_v36, 0.7853982  ;;  %vm654_vm14 = vweird.f32 %v1361_v24 }
 0x16c   :  { %778 = vst [vmem:[#allocation2 + $0x10] sm:$0xff] %v772_v39  ;;  %v625_v52 = vshll.u32 %v624_v57, 30  ;;  %v760_v37 = vand.u32 3, %v759_v14  ;;  %v648_v29 = vsub.s32 4, %v624_v57 }
 0x16d   :  { %v745_v55 = vor.u32 4788187, %v744_v33  ;;  %v748_v59 = vcvt.s32.f32 %v741_v20 }
 0x16e   :  { %v626_v23 = vsub.s32 %v622_v45, %v625_v52  ;;  %vm765_vm5 = vcmp.eq.s32.totalorder %v760_v37, 2  ;;  %vm762_vm6 = vcmp.eq.s32.totalorder %v760_v37, 0  ;;  %vm761_vm7 = vcmp.lt.s32.totalorder %v760_v37, 2 }
 0x16f   :  { %v746_v22 = vand.u32 2147483647, %v745_v55  ;;  %v649_v11 = vsel %vm564_vm9, %v648_v29, %v624_v57 }
 0x170   :  { %v628_v63 = vsub.s32 0, %v626_v23  ;;  %v651_v5 = vsel %vm563_vm10, 0, %v649_v11 }
 0x171   :  { %v749_v54 = vmul.f32 %v748_v59, %v746_v22 }
 0x172   :  { %v822_v56 = vmin.u32 %v628_v63, %v626_v23 }
 0x173   :  { %v750_v62 = vxor.u32 2147483648, %v749_v54 }
 0x174   :  { %v630_v16 = vclz %v822_v56 }
 0x175   :  { %v751_v2 = vsel %vm668_vm2, %v750_v62, %v749_v54 }
 0x176   :  { %v754_v58 = vsel %vm667_vm3, %v1308_v1, %v751_v2  ;;  %v823_v3 = vadd.s32 4294967294, %v630_v16  ;;  %v655_v1 = vadd.s32 3, %v651_v5 }
 0x177   :  { %917 = vcosq.f32 %v754_v58 }
 0x178   :  { %919 = vsinq.f32 %v754_v58  ;;  %vm824_vm4 = vcmp.lt.s32.totalorder %v823_v3, 0  ;;  %v656_v32 = vand.u32 3, %v655_v1 }
 0x179   :  { %v633_v42 = vsel %vm824_vm4, 0, %v823_v3 }
 0x17a   :  { %v634_v10 = vsub.s32 32, %v633_v42  ;;  %v638_v49 = vsub.s32 4294967266, %v633_v42  ;;  %v635_v47 = vshll.u32 %v626_v23, %v633_v42  ;;  %vm661_vm11 = vcmp.eq.s32.totalorder %v656_v32, 2 }
 0x17b   :  { %vm658_vm12 = vcmp.eq.s32.totalorder %v656_v32, 0  ;;  %vm657_vm13 = vcmp.lt.s32.totalorder %v656_v32, 2 }
 0x17c   :  { %v636_v7 = vshrl.u32 %v618_v46, %v634_v10  ;;  %v639_v43 = vadd.s32 127, %v638_v49 }
 0x17e   :  { %v637_v17 = vor.u32 %v636_v7, %v635_v47  ;;  %v640_v9 = vshll.u32 %v639_v43, 23 }
 0x180   :  { %v641_v6 = vor.u32 4788187, %v640_v9  ;;  %v644_v13 = vcvt.s32.f32 %v637_v17 }
 0x181   :  { %v918_v12 = vpop.eup %917 }
 0x182   :  { %v920_v25 = vpop.eup %919  ;;  %v766_v61 = vxor.u32 2147483648, %v918_v12  ;;  %v642_v15 = vand.u32 2147483647, %v641_v6 }
 0x183   :  { %v763_v30 = vxor.u32 2147483648, %v920_v25 }
 0x184   :  { %v767_v31 = vsel %vm765_vm5, %v766_v61, %v920_v25  ;;  %v645_v27 = vmul.f32 %v644_v13, %v642_v15 }
 0x185   :  { %v764_v18 = vsel %vm762_vm6, %v918_v12, %v763_v30 }
 0x186   :  { %v768_v21 = vsel %vm761_vm7, %v764_v18, %v767_v31  ;;  %v646_v19 = vxor.u32 2147483648, %v645_v27 }
 0x187   :  { %v769_v50 = vsel %vm758_vm8, nan, %v768_v21 }
 0x188   :  { %v775_v4 = vmul.f32 30.0, %v769_v50  ;;  %v647_v26 = vsel %vm564_vm9, %v646_v19, %v645_v27 }
 0x189   :  { %v650_v48 = vsel %vm563_vm10, %v1361_v24, %v647_v26 }
 0x18a   :  { %781 = vst [vmem:[#allocation2 + $0x28] sm:$0xff] %v775_v4  ;;  %921 = vcosq.f32 %v650_v48 }
 0x18b   :  { %923 = vsinq.f32 %v650_v48 }
 0x194   :  { %v922_v0 = vpop.eup %921 }
 0x195   :  { %v924_v28 = vpop.eup %923  ;;  %v662_v34 = vxor.u32 2147483648, %v922_v0 }
 0x196   :  { %v659_v8 = vxor.u32 2147483648, %v924_v28 }
 0x197   :  { %v663_v35 = vsel %vm661_vm11, %v662_v34, %v924_v28 }
 0x198   :  { %v660_v51 = vsel %vm658_vm12, %v922_v0, %v659_v8 }
 0x199   :  { %v664_v36 = vsel %vm657_vm13, %v660_v51, %v663_v35 }
 0x19a   :  { %v665_v39 = vsel %vm654_vm14, nan, %v664_v36 }
 0x19b   :  { %v774_v38 = vmul.f32 30.0, %v665_v39 }
 0x19d   :  { %780 = vst [vmem:[#allocation2 + $0x20] sm:$0xff] %v774_v38 }
 0x19e   :  { %936 = shalt.err (!%p933_p4)
}
 0x19f   :  { %s937_s9 = scalar_lea.hbm %s1509_s3, 768 }
 0x1a0   :  { %p938_p5 = scmp.ne.s32.totalorder %s1509_s3, %s937_s9  ;;  %p941_p6 = scmp.lt.u32.totalorder %s937_s9, %s1509_s3 }
 0x1a2   :  { %p943_p7 = pnand %p941_p6, %p938_p5 }
 0x1a4   :  { %946 = shalt.err (!%p943_p7)
}
 0x1a5   :  { %s956_s14 = smov 128   ;;  %s957_s15 = smov 8  }
 0x1a6   :  { %793 = dma.vmem_to_hbm [thread:$0]  %s788_s2, 768, %s1509_s3, [#allocation3], %s956_s14, %s956_s14, %s957_s15  }
 0x1a7   :  { %947 = dma.done.wait [#allocation3], 768  }
 0x1a8   :  { %948 = vsyncadd [#allocation3], 4294966528 }
 0x1a9   :  { %797 = vsyncpa [#allocation3], 1 }

</bundles_post_ra>
